<compile_context>
chip_gen: v7x
topology: tpu7x:2x2x1
jax: 0.10.0
libtpu: 0.0.40
codegen_flags: <defaults>
</compile_context>

<pallas_src>
import functools

import jax
import jax.numpy as jnp
import numpy as np
from jax import lax
from jax.experimental import pallas as pl
from jax.experimental.pallas import tpu as pltpu

NCP = 128  # lane-padded logits width (sliced back to NUM_CLASSES in wrapper)


# ----------------------------- Pallas kernel --------------------------------
def _server_model_kernel(x_ref, wf_ref, maskv_ref, wfc_ref, bfc_ref, out_ref,
                         slab_ref, *, K, C, Wp, PW, Bblk):
    """Conv(3x3,SAME) -> sigmoid -> global-avg-pool -> linear for Bblk images.

    x_ref    : (Bblk, C, L)      f32  zero-padded images, flattened rows
    wf_ref   : (OC, K*K*C + 1)   f32  fused conv weight, last col = conv bias
    maskv_ref: (1, PW)           f32  1/(H*W) on valid columns, 0 on wrap junk
    wfc_ref  : (OC, NCP)         f32  classifier weight^T, lane-padded
    bfc_ref  : (1, NCP)          f32  classifier bias, lane-padded
    out_ref  : (Bblk, NCP)       f32  lane-padded logits
    slab_ref : (K*K*C + 1, PW)   f32  VMEM scratch: im2col slab (+ bias row)
    """
    KKC = K * K * C

    # Constant-1 bias row of the im2col slab (conv bias folded into the dot).
    slab_ref[KKC:KKC + 1, :] = jnp.ones((1, PW), jnp.float32)

    # Static unroll over the batch block: one grid step amortizes the fixed
    # per-step overhead across all Bblk elements.
    for b in range(Bblk):
        xb = x_ref[b]                                      # (C, L)

        # Fused im2col: K*K lane-shifted copies into the slab (paid once per
        # tap, off the MXU-feeding path), row t*C + c <-> channel c, tap t.
        for t in range(K * K):
            off = (t // K) * Wp + (t % K)                  # static lane offset
            slab_ref[t * C:(t + 1) * C, :] = xb[:, off:off + PW]

        # One MXU matmul, (K*K*C+1)-deep contraction, f32 accumulation.
        h = jnp.dot(wf_ref[...], slab_ref[...],
                    preferred_element_type=jnp.float32)    # (OC, PW)

        # Sigmoid via a single EUP pass: sigmoid(h) = 0.5 + 0.5*tanh(h/2).
        s = 0.5 + 0.5 * jnp.tanh(0.5 * h)

        # Global average pool over valid spatial positions (row-wrap junk
        # columns masked; the 1/(H*W) scale is folded into maskv).
        pooled = jnp.sum(s * maskv_ref[...], axis=1, keepdims=True)   # (OC, 1)

        # Classifier head: broadcast-multiply + sublane reduce onto a
        # lane-dense (1, 128) logits slab.
        logits = (jnp.sum(pooled * wfc_ref[...], axis=0, keepdims=True)
                  + bfc_ref[...])                          # (1, NCP)
        out_ref[b:b + 1, :] = logits.astype(out_ref.dtype)


# ------------------------------ JAX glue -------------------------------------
def make_base_server_forward(params, *, num_classes):
    """Packs the server_model parameters ONCE and returns jitted forward(x).

    Equivalent of BaseServer.forward(x) == server_model(x).
    """
    w_conv, b_conv, w_fc, b_fc = [jnp.asarray(p, jnp.float32) for p in params]
    OC, C, K, _ = w_conv.shape
    assert num_classes <= NCP
    KKC = K * K * C

    # --- one-time weight repacking (hoisted out of the per-call path) -------
    # Fused conv weight: column t*C + c = w[oc, c, dh, dw], t = dh*K + dw;
    # final column is the conv bias (matched by the constant-1 slab row).
    wt = jnp.transpose(w_conv, (0, 2, 3, 1)).reshape(OC, KKC)
    w_fused = jnp.concatenate([wt, b_conv.reshape(OC, 1)], axis=1)  # (OC,KKC+1)
    wfc = jnp.zeros((OC, NCP), jnp.float32).at[:, :num_classes].set(w_fc.T)
    bfc = jnp.zeros((1, NCP), jnp.float32).at[:, :num_classes].set(b_fc)

    @jax.jit
    def forward(x):
        B, Cx, H, W = x.shape
        assert Cx == C
        pad = (K - 1) // 2
        Hp, Wp = H + 2 * pad, W + 2 * pad
        PW = H * Wp                       # extended positions (junk masked)
        max_off = (K - 1) * Wp + (K - 1)
        need = PW + max_off               # furthest lane any tap slice reads
        extra_h = max(0, -(-(need - Hp * Wp) // Wp))

        # Single pad op: SAME spatial pad + extra zero bottom row(s) covering
        # the largest tap offset; then flatten.  No tail pad, no dtype cast.
        xp = jnp.pad(x.astype(jnp.float32),
                     ((0, 0), (0, 0), (pad, pad + extra_h), (pad, pad)))
        xflat = xp.reshape(B, C, -1)      # (B, C, L)
        L = xflat.shape[-1]

        # Valid-column pooling mask with 1/(H*W) folded in.  Built with numpy
        # at trace time -> a literal constant, zero runtime HLO ops.
        col = np.arange(PW, dtype=np.int32) % Wp
        maskv = jnp.asarray(
            (col < W).astype(np.float32) * (1.0 / (H * W))).reshape(1, PW)

        # Fold the whole (small) batch into one grid step when possible so the
        # fixed per-step overhead is paid once; block at 8 for larger batches
        # (keeps the (Bblk, NCP) output block sublane-aligned and lets
        # "parallel" grid semantics feed v7x's second TensorCore).
        if B <= 8:
            Bblk, Bpad = B, B
        else:
            Bblk = 8
            Bpad = ((B + 7) // 8) * 8
            xflat = jnp.pad(xflat, ((0, Bpad - B), (0, 0), (0, 0)))

        kernel = functools.partial(_server_model_kernel,
                                   K=K, C=C, Wp=Wp, PW=PW, Bblk=Bblk)

        out = pl.pallas_call(
            kernel,
            out_shape=jax.ShapeDtypeStruct((Bpad, NCP), jnp.float32),
            grid=(Bpad // Bblk,),
            in_specs=[
                pl.BlockSpec((Bblk, C, L), lambda i: (i, 0, 0)),
                pl.BlockSpec((OC, KKC + 1), lambda i: (0, 0)),
                pl.BlockSpec((1, PW), lambda i: (0, 0)),
                pl.BlockSpec((OC, NCP), lambda i: (0, 0)),
                pl.BlockSpec((1, NCP), lambda i: (0, 0)),
            ],
            out_specs=pl.BlockSpec((Bblk, NCP), lambda i: (i, 0)),
            scratch_shapes=[pltpu.VMEM((KKC + 1, PW), jnp.float32)],
            compiler_params=pltpu.CompilerParams(
                dimension_semantics=("parallel",)),
            cost_estimate=pl.CostEstimate(
                flops=int(2 * Bpad * OC * (KKC + 1) * PW
                          + 2 * Bpad * OC * NCP),
                transcendentals=int(Bpad * OC * PW),        # one tanh / elem
                bytes_accessed=int(4 * (Bpad * C * L + OC * (KKC + 1) + PW
                                        + OC * NCP + NCP + Bpad * NCP)),
            ),
        )(xflat, w_fused, maskv, wfc, bfc)

        return out[:B, :num_classes]

    return forward


def _reference_forward(x, params, num_classes):
    """Pure-JAX/XLA reference (independent of the kernel's math path)."""
    w_conv, b_conv, w_fc, b_fc = params
    y = lax.conv_general_dilated(
        x, w_conv, window_strides=(1, 1), padding="SAME",
        dimension_numbers=("NCHW", "OIHW", "NCHW"))
    y = y + b_conv.reshape(1, -1, 1, 1)
    s = jax.nn.sigmoid(y)
    pooled = jnp.mean(s, axis=(2, 3))
    return pooled @ w_fc.T + b_fc.reshape(1, num_classes)


# ------------------------------ main -----------------------------------------
if __name__ == "__main__":
    B, C, H, W = 2, 4, 16, 16
    OC, K, NUM_CLASSES = 8, 3, 10

    key = jax.random.PRNGKey(0)
    k_x, k_wc, k_bc, k_wf, k_bf = jax.random.split(key, 5)

    x = jax.random.normal(k_x, (B, C, H, W), dtype=jnp.float32)

    # Deterministic synthetic "server_model" parameters (PyTorch layouts).
    w_conv = jax.random.normal(k_wc, (OC, C, K, K), dtype=jnp.float32) * 0.1
    b_conv = jax.random.normal(k_bc, (OC,), dtype=jnp.float32) * 0.1
    w_fc = jax.random.normal(k_wf, (NUM_CLASSES, OC), dtype=jnp.float32) * 0.1
    b_fc = jax.random.normal(k_bf, (NUM_CLASSES,), dtype=jnp.float32) * 0.1
    params = (w_conv, b_conv, w_fc, b_fc)

    # Pack params once (hoisted), then run the forward pass.
    forward = make_base_server_forward(params, num_classes=NUM_CLASSES)
    logits = jax.block_until_ready(forward(x))

    ref = _reference_forward(x, params, NUM_CLASSES)
    # Tightened vs. the previous 2e-2: exact-form tanh sigmoid + f32 operands;
    # remaining slack covers default (bf16-pass) matmul precision differences.
    np.testing.assert_allclose(np.asarray(logits), np.asarray(ref),
                               atol=5e-3, rtol=5e-3)

    # TODO(synk): train()/eval()/action()/update()/distribute() are FL
    # bookkeeping / abstract methods with no tensor compute -> no kernel.
    print("KERNEL_OK")
</pallas_src>

<mosaic_0001>
module attributes {stable_mosaic.version = 11 : i64} {
  func.func @_server_model_kernel(%arg0: i32, %arg1: memref<2x4x342xf32, #tpu.memory_space<vmem>>, %arg2: memref<8x37xf32, #tpu.memory_space<vmem>>, %arg3: memref<1x288xf32, #tpu.memory_space<vmem>>, %arg4: memref<8x128xf32, #tpu.memory_space<vmem>>, %arg5: memref<1x128xf32, #tpu.memory_space<vmem>>, %arg6: memref<2x128xf32, #tpu.memory_space<vmem>>, %arg7: memref<37x288xf32, #tpu.memory_space<vmem>>) attributes {dimension_semantics = [#tpu.dimension_semantics<parallel>], iteration_bounds = array<i64: 1>, scalar_prefetch = 0 : i64, scratch_operands = 1 : i64, tpu.core_type = #tpu.core_type<tc>, window_params = [{transform_indices = @transform_0, window_bounds = array<i64: 2, 4, 342>}, {pipeline_mode = #tpu.pipeline_mode<synchronous>, transform_indices = @transform_1, window_bounds = array<i64: 8, 37>}, {pipeline_mode = #tpu.pipeline_mode<synchronous>, transform_indices = @transform_2, window_bounds = array<i64: 1, 288>}, {pipeline_mode = #tpu.pipeline_mode<synchronous>, transform_indices = @transform_3, window_bounds = array<i64: 8, 128>}, {pipeline_mode = #tpu.pipeline_mode<synchronous>, transform_indices = @transform_4, window_bounds = array<i64: 1, 128>}, {transform_indices = @transform_5, window_bounds = array<i64: 2, 128>}]} {
    %cst = arith.constant 1.000000e+00 : f32
    %0 = vector.broadcast %cst : f32 to vector<1x288xf32>
    %c36 = arith.constant 36 : index
    %c0 = arith.constant 0 : index
    %1 = vector.load %arg7[%c36, %c0] : memref<37x288xf32, #tpu.memory_space<vmem>>, vector<1x288xf32>
    tpu.vector_store %arg7[%c36, %c0], %0 {strides = array<i32>} : memref<37x288xf32, #tpu.memory_space<vmem>>, vector<1x288xf32>,
    %c0_0 = arith.constant 0 : index
    %c0_1 = arith.constant 0 : index
    %c0_2 = arith.constant 0 : index
    %2 = vector.load %arg1[%c0_0, %c0_1, %c0_2] : memref<2x4x342xf32, #tpu.memory_space<vmem>>, vector<1x4x342xf32>
    %3 = vector.shape_cast %2 : vector<1x4x342xf32> to vector<4x342xf32>
    %4 = vector.extract_strided_slice %3 {offsets = [0, 0], sizes = [4, 288], strides = [1, 1]} : vector<4x342xf32> to vector<4x288xf32>
    %c0_3 = arith.constant 0 : index
    %c0_4 = arith.constant 0 : index
    %5 = vector.load %arg7[%c0_3, %c0_4] : memref<37x288xf32, #tpu.memory_space<vmem>>, vector<4x288xf32>
    tpu.vector_store %arg7[%c0_3, %c0_4], %4 {strides = array<i32>} : memref<37x288xf32, #tpu.memory_space<vmem>>, vector<4x288xf32>,
    %6 = vector.extract_strided_slice %3 {offsets = [0, 1], sizes = [4, 288], strides = [1, 1]} : vector<4x342xf32> to vector<4x288xf32>
    %c4 = arith.constant 4 : index
    %c0_5 = arith.constant 0 : index
    %7 = vector.load %arg7[%c4, %c0_5] : memref<37x288xf32, #tpu.memory_space<vmem>>, vector<4x288xf32>
    tpu.vector_store %arg7[%c4, %c0_5], %6 {strides = array<i32>} : memref<37x288xf32, #tpu.memory_space<vmem>>, vector<4x288xf32>,
    %8 = vector.extract_strided_slice %3 {offsets = [0, 2], sizes = [4, 288], strides = [1, 1]} : vector<4x342xf32> to vector<4x288xf32>
    %c8 = arith.constant 8 : index
    %c0_6 = arith.constant 0 : index
    %9 = vector.load %arg7[%c8, %c0_6] : memref<37x288xf32, #tpu.memory_space<vmem>>, vector<4x288xf32>
    tpu.vector_store %arg7[%c8, %c0_6], %8 {strides = array<i32>} : memref<37x288xf32, #tpu.memory_space<vmem>>, vector<4x288xf32>,
    %10 = vector.extract_strided_slice %3 {offsets = [0, 18], sizes = [4, 288], strides = [1, 1]} : vector<4x342xf32> to vector<4x288xf32>
    %c12 = arith.constant 12 : index
    %c0_7 = arith.constant 0 : index
    %11 = vector.load %arg7[%c12, %c0_7] : memref<37x288xf32, #tpu.memory_space<vmem>>, vector<4x288xf32>
    tpu.vector_store %arg7[%c12, %c0_7], %10 {strides = array<i32>} : memref<37x288xf32, #tpu.memory_space<vmem>>, vector<4x288xf32>,
    %12 = vector.extract_strided_slice %3 {offsets = [0, 19], sizes = [4, 288], strides = [1, 1]} : vector<4x342xf32> to vector<4x288xf32>
    %c16 = arith.constant 16 : index
    %c0_8 = arith.constant 0 : index
    %13 = vector.load %arg7[%c16, %c0_8] : memref<37x288xf32, #tpu.memory_space<vmem>>, vector<4x288xf32>
    tpu.vector_store %arg7[%c16, %c0_8], %12 {strides = array<i32>} : memref<37x288xf32, #tpu.memory_space<vmem>>, vector<4x288xf32>,
    %14 = vector.extract_strided_slice %3 {offsets = [0, 20], sizes = [4, 288], strides = [1, 1]} : vector<4x342xf32> to vector<4x288xf32>
    %c20 = arith.constant 20 : index
    %c0_9 = arith.constant 0 : index
    %15 = vector.load %arg7[%c20, %c0_9] : memref<37x288xf32, #tpu.memory_space<vmem>>, vector<4x288xf32>
    tpu.vector_store %arg7[%c20, %c0_9], %14 {strides = array<i32>} : memref<37x288xf32, #tpu.memory_space<vmem>>, vector<4x288xf32>,
    %16 = vector.extract_strided_slice %3 {offsets = [0, 36], sizes = [4, 288], strides = [1, 1]} : vector<4x342xf32> to vector<4x288xf32>
    %c24 = arith.constant 24 : index
    %c0_10 = arith.constant 0 : index
    %17 = vector.load %arg7[%c24, %c0_10] : memref<37x288xf32, #tpu.memory_space<vmem>>, vector<4x288xf32>
    tpu.vector_store %arg7[%c24, %c0_10], %16 {strides = array<i32>} : memref<37x288xf32, #tpu.memory_space<vmem>>, vector<4x288xf32>,
    %18 = vector.extract_strided_slice %3 {offsets = [0, 37], sizes = [4, 288], strides = [1, 1]} : vector<4x342xf32> to vector<4x288xf32>
    %c28 = arith.constant 28 : index
    %c0_11 = arith.constant 0 : index
    %19 = vector.load %arg7[%c28, %c0_11] : memref<37x288xf32, #tpu.memory_space<vmem>>, vector<4x288xf32>
    tpu.vector_store %arg7[%c28, %c0_11], %18 {strides = array<i32>} : memref<37x288xf32, #tpu.memory_space<vmem>>, vector<4x288xf32>,
    %20 = vector.extract_strided_slice %3 {offsets = [0, 38], sizes = [4, 288], strides = [1, 1]} : vector<4x342xf32> to vector<4x288xf32>
    %c32 = arith.constant 32 : index
    %c0_12 = arith.constant 0 : index
    %21 = vector.load %arg7[%c32, %c0_12] : memref<37x288xf32, #tpu.memory_space<vmem>>, vector<4x288xf32>
    tpu.vector_store %arg7[%c32, %c0_12], %20 {strides = array<i32>} : memref<37x288xf32, #tpu.memory_space<vmem>>, vector<4x288xf32>,
    %c0_13 = arith.constant 0 : index
    %c0_14 = arith.constant 0 : index
    %22 = vector.load %arg2[%c0_13, %c0_14] : memref<8x37xf32, #tpu.memory_space<vmem>>, vector<8x37xf32>
    %c0_15 = arith.constant 0 : index
    %c0_16 = arith.constant 0 : index
    %23 = vector.load %arg7[%c0_15, %c0_16] : memref<37x288xf32, #tpu.memory_space<vmem>>, vector<37x288xf32>
    %cst_17 = arith.constant dense<0.000000e+00> : vector<8x288xf32>
    %24 = tpu.matmul %22, %23, %cst_17 {dimension_numbers = #tpu.dot_dimension_numbers<[1], [0], [0], [1], [0, 0, 1, 1], [], []>} : vector<8x37xf32>, vector<37x288xf32>, vector<8x288xf32> -> vector<8x288xf32>
    %cst_18 = arith.constant 5.000000e-01 : f32
    %25 = vector.broadcast %cst_18 : f32 to vector<8x288xf32>
    %26 = arith.mulf %25, %24 : vector<8x288xf32>
    %27 = math.tanh %26 : vector<8x288xf32>
    %cst_19 = arith.constant 5.000000e-01 : f32
    %28 = vector.broadcast %cst_19 : f32 to vector<8x288xf32>
    %29 = arith.mulf %28, %27 : vector<8x288xf32>
    %cst_20 = arith.constant 5.000000e-01 : f32
    %30 = vector.broadcast %cst_20 : f32 to vector<8x288xf32>
    %31 = arith.addf %30, %29 : vector<8x288xf32>
    %c0_21 = arith.constant 0 : index
    %c0_22 = arith.constant 0 : index
    %32 = vector.load %arg3[%c0_21, %c0_22] : memref<1x288xf32, #tpu.memory_space<vmem>>, vector<1x288xf32>
    %33 = vector.broadcast %32 : vector<1x288xf32> to vector<8x288xf32>
    %34 = arith.mulf %31, %33 : vector<8x288xf32>
    %cst_23 = arith.constant dense<0.000000e+00> : vector<8xf32>
    %35 = vector.multi_reduction <add>, %34, %cst_23 [1] : vector<8x288xf32> to vector<8xf32>
    %36 = vector.shape_cast %35 : vector<8xf32> to vector<8x1xf32>
    %c0_24 = arith.constant 0 : index
    %c0_25 = arith.constant 0 : index
    %37 = vector.load %arg4[%c0_24, %c0_25] : memref<8x128xf32, #tpu.memory_space<vmem>>, vector<8x128xf32>
    %38 = vector.broadcast %36 : vector<8x1xf32> to vector<8x128xf32>
    %39 = arith.mulf %38, %37 : vector<8x128xf32>
    %cst_26 = arith.constant dense<0.000000e+00> : vector<128xf32>
    %40 = vector.multi_reduction <add>, %39, %cst_26 [0] : vector<8x128xf32> to vector<128xf32>
    %41 = vector.shape_cast %40 : vector<128xf32> to vector<1x128xf32>
    %c0_27 = arith.constant 0 : index
    %c0_28 = arith.constant 0 : index
    %42 = vector.load %arg5[%c0_27, %c0_28] : memref<1x128xf32, #tpu.memory_space<vmem>>, vector<1x128xf32>
    %43 = arith.addf %41, %42 : vector<1x128xf32>
    %c0_29 = arith.constant 0 : index
    %c0_30 = arith.constant 0 : index
    %44 = vector.load %arg6[%c0_29, %c0_30] : memref<2x128xf32, #tpu.memory_space<vmem>>, vector<1x128xf32>
    tpu.vector_store %arg6[%c0_29, %c0_30], %43 {strides = array<i32>} : memref<2x128xf32, #tpu.memory_space<vmem>>, vector<1x128xf32>,
    %c1 = arith.constant 1 : index
    %c0_31 = arith.constant 0 : index
    %c0_32 = arith.constant 0 : index
    %45 = vector.load %arg1[%c1, %c0_31, %c0_32] : memref<2x4x342xf32, #tpu.memory_space<vmem>>, vector<1x4x342xf32>
    %46 = vector.shape_cast %45 : vector<1x4x342xf32> to vector<4x342xf32>
    %47 = vector.extract_strided_slice %46 {offsets = [0, 0], sizes = [4, 288], strides = [1, 1]} : vector<4x342xf32> to vector<4x288xf32>
    %c0_33 = arith.constant 0 : index
    %c0_34 = arith.constant 0 : index
    %48 = vector.load %arg7[%c0_33, %c0_34] : memref<37x288xf32, #tpu.memory_space<vmem>>, vector<4x288xf32>
    tpu.vector_store %arg7[%c0_33, %c0_34], %47 {strides = array<i32>} : memref<37x288xf32, #tpu.memory_space<vmem>>, vector<4x288xf32>,
    %49 = vector.extract_strided_slice %46 {offsets = [0, 1], sizes = [4, 288], strides = [1, 1]} : vector<4x342xf32> to vector<4x288xf32>
    %c4_35 = arith.constant 4 : index
    %c0_36 = arith.constant 0 : index
    %50 = vector.load %arg7[%c4_35, %c0_36] : memref<37x288xf32, #tpu.memory_space<vmem>>, vector<4x288xf32>
    tpu.vector_store %arg7[%c4_35, %c0_36], %49 {strides = array<i32>} : memref<37x288xf32, #tpu.memory_space<vmem>>, vector<4x288xf32>,
    %51 = vector.extract_strided_slice %46 {offsets = [0, 2], sizes = [4, 288], strides = [1, 1]} : vector<4x342xf32> to vector<4x288xf32>
    %c8_37 = arith.constant 8 : index
    %c0_38 = arith.constant 0 : index
    %52 = vector.load %arg7[%c8_37, %c0_38] : memref<37x288xf32, #tpu.memory_space<vmem>>, vector<4x288xf32>
    tpu.vector_store %arg7[%c8_37, %c0_38], %51 {strides = array<i32>} : memref<37x288xf32, #tpu.memory_space<vmem>>, vector<4x288xf32>,
    %53 = vector.extract_strided_slice %46 {offsets = [0, 18], sizes = [4, 288], strides = [1, 1]} : vector<4x342xf32> to vector<4x288xf32>
    %c12_39 = arith.constant 12 : index
    %c0_40 = arith.constant 0 : index
    %54 = vector.load %arg7[%c12_39, %c0_40] : memref<37x288xf32, #tpu.memory_space<vmem>>, vector<4x288xf32>
    tpu.vector_store %arg7[%c12_39, %c0_40], %53 {strides = array<i32>} : memref<37x288xf32, #tpu.memory_space<vmem>>, vector<4x288xf32>,
    %55 = vector.extract_strided_slice %46 {offsets = [0, 19], sizes = [4, 288], strides = [1, 1]} : vector<4x342xf32> to vector<4x288xf32>
    %c16_41 = arith.constant 16 : index
    %c0_42 = arith.constant 0 : index
    %56 = vector.load %arg7[%c16_41, %c0_42] : memref<37x288xf32, #tpu.memory_space<vmem>>, vector<4x288xf32>
    tpu.vector_store %arg7[%c16_41, %c0_42], %55 {strides = array<i32>} : memref<37x288xf32, #tpu.memory_space<vmem>>, vector<4x288xf32>,
    %57 = vector.extract_strided_slice %46 {offsets = [0, 20], sizes = [4, 288], strides = [1, 1]} : vector<4x342xf32> to vector<4x288xf32>
    %c20_43 = arith.constant 20 : index
    %c0_44 = arith.constant 0 : index
    %58 = vector.load %arg7[%c20_43, %c0_44] : memref<37x288xf32, #tpu.memory_space<vmem>>, vector<4x288xf32>
    tpu.vector_store %arg7[%c20_43, %c0_44], %57 {strides = array<i32>} : memref<37x288xf32, #tpu.memory_space<vmem>>, vector<4x288xf32>,
    %59 = vector.extract_strided_slice %46 {offsets = [0, 36], sizes = [4, 288], strides = [1, 1]} : vector<4x342xf32> to vector<4x288xf32>
    %c24_45 = arith.constant 24 : index
    %c0_46 = arith.constant 0 : index
    %60 = vector.load %arg7[%c24_45, %c0_46] : memref<37x288xf32, #tpu.memory_space<vmem>>, vector<4x288xf32>
    tpu.vector_store %arg7[%c24_45, %c0_46], %59 {strides = array<i32>} : memref<37x288xf32, #tpu.memory_space<vmem>>, vector<4x288xf32>,
    %61 = vector.extract_strided_slice %46 {offsets = [0, 37], sizes = [4, 288], strides = [1, 1]} : vector<4x342xf32> to vector<4x288xf32>
    %c28_47 = arith.constant 28 : index
    %c0_48 = arith.constant 0 : index
    %62 = vector.load %arg7[%c28_47, %c0_48] : memref<37x288xf32, #tpu.memory_space<vmem>>, vector<4x288xf32>
    tpu.vector_store %arg7[%c28_47, %c0_48], %61 {strides = array<i32>} : memref<37x288xf32, #tpu.memory_space<vmem>>, vector<4x288xf32>,
    %63 = vector.extract_strided_slice %46 {offsets = [0, 38], sizes = [4, 288], strides = [1, 1]} : vector<4x342xf32> to vector<4x288xf32>
    %c32_49 = arith.constant 32 : index
    %c0_50 = arith.constant 0 : index
    %64 = vector.load %arg7[%c32_49, %c0_50] : memref<37x288xf32, #tpu.memory_space<vmem>>, vector<4x288xf32>
    tpu.vector_store %arg7[%c32_49, %c0_50], %63 {strides = array<i32>} : memref<37x288xf32, #tpu.memory_space<vmem>>, vector<4x288xf32>,
    %c0_51 = arith.constant 0 : index
    %c0_52 = arith.constant 0 : index
    %65 = vector.load %arg2[%c0_51, %c0_52] : memref<8x37xf32, #tpu.memory_space<vmem>>, vector<8x37xf32>
    %c0_53 = arith.constant 0 : index
    %c0_54 = arith.constant 0 : index
    %66 = vector.load %arg7[%c0_53, %c0_54] : memref<37x288xf32, #tpu.memory_space<vmem>>, vector<37x288xf32>
    %cst_55 = arith.constant dense<0.000000e+00> : vector<8x288xf32>
    %67 = tpu.matmul %65, %66, %cst_55 {dimension_numbers = #tpu.dot_dimension_numbers<[1], [0], [0], [1], [0, 0, 1, 1], [], []>} : vector<8x37xf32>, vector<37x288xf32>, vector<8x288xf32> -> vector<8x288xf32>
    %cst_56 = arith.constant 5.000000e-01 : f32
    %68 = vector.broadcast %cst_56 : f32 to vector<8x288xf32>
    %69 = arith.mulf %68, %67 : vector<8x288xf32>
    %70 = math.tanh %69 : vector<8x288xf32>
    %cst_57 = arith.constant 5.000000e-01 : f32
    %71 = vector.broadcast %cst_57 : f32 to vector<8x288xf32>
    %72 = arith.mulf %71, %70 : vector<8x288xf32>
    %cst_58 = arith.constant 5.000000e-01 : f32
    %73 = vector.broadcast %cst_58 : f32 to vector<8x288xf32>
    %74 = arith.addf %73, %72 : vector<8x288xf32>
    %c0_59 = arith.constant 0 : index
    %c0_60 = arith.constant 0 : index
    %75 = vector.load %arg3[%c0_59, %c0_60] : memref<1x288xf32, #tpu.memory_space<vmem>>, vector<1x288xf32>
    %76 = vector.broadcast %75 : vector<1x288xf32> to vector<8x288xf32>
    %77 = arith.mulf %74, %76 : vector<8x288xf32>
    %cst_61 = arith.constant dense<0.000000e+00> : vector<8xf32>
    %78 = vector.multi_reduction <add>, %77, %cst_61 [1] : vector<8x288xf32> to vector<8xf32>
    %79 = vector.shape_cast %78 : vector<8xf32> to vector<8x1xf32>
    %c0_62 = arith.constant 0 : index
    %c0_63 = arith.constant 0 : index
    %80 = vector.load %arg4[%c0_62, %c0_63] : memref<8x128xf32, #tpu.memory_space<vmem>>, vector<8x128xf32>
    %81 = vector.broadcast %79 : vector<8x1xf32> to vector<8x128xf32>
    %82 = arith.mulf %81, %80 : vector<8x128xf32>
    %cst_64 = arith.constant dense<0.000000e+00> : vector<128xf32>
    %83 = vector.multi_reduction <add>, %82, %cst_64 [0] : vector<8x128xf32> to vector<128xf32>
    %84 = vector.shape_cast %83 : vector<128xf32> to vector<1x128xf32>
    %c0_65 = arith.constant 0 : index
    %c0_66 = arith.constant 0 : index
    %85 = vector.load %arg5[%c0_65, %c0_66] : memref<1x128xf32, #tpu.memory_space<vmem>>, vector<1x128xf32>
    %86 = arith.addf %84, %85 : vector<1x128xf32>
    %c1_67 = arith.constant 1 : index
    %c0_68 = arith.constant 0 : index
    %87 = vector.load %arg6[%c1_67, %c0_68] : memref<2x128xf32, #tpu.memory_space<vmem>>, vector<1x128xf32>
    tpu.vector_store %arg6[%c1_67, %c0_68], %86 {strides = array<i32>} : memref<2x128xf32, #tpu.memory_space<vmem>>, vector<1x128xf32>,
    return
  }
  func.func @transform_0(%arg0: i32) -> (i32, i32, i32) {
    %c0_i32 = arith.constant 0 : i32
    %c0_i32_0 = arith.constant 0 : i32
    %c0_i32_1 = arith.constant 0 : i32
    return %arg0, %c0_i32, %c0_i32_0 : i32, i32, i32
  }
  func.func @transform_1(%arg0: i32) -> (i32, i32) {
    %c0_i32 = arith.constant 0 : i32
    %c0_i32_0 = arith.constant 0 : i32
    %c0_i32_1 = arith.constant 0 : i32
    return %c0_i32, %c0_i32_0 : i32, i32
  }
  func.func @transform_2(%arg0: i32) -> (i32, i32) {
    %c0_i32 = arith.constant 0 : i32
    %c0_i32_0 = arith.constant 0 : i32
    %c0_i32_1 = arith.constant 0 : i32
    return %c0_i32, %c0_i32_0 : i32, i32
  }
  func.func @transform_3(%arg0: i32) -> (i32, i32) {
    %c0_i32 = arith.constant 0 : i32
    %c0_i32_0 = arith.constant 0 : i32
    %c0_i32_1 = arith.constant 0 : i32
    return %c0_i32, %c0_i32_0 : i32, i32
  }
  func.func @transform_4(%arg0: i32) -> (i32, i32) {
    %c0_i32 = arith.constant 0 : i32
    %c0_i32_0 = arith.constant 0 : i32
    %c0_i32_1 = arith.constant 0 : i32
    return %c0_i32, %c0_i32_0 : i32, i32
  }
  func.func @transform_5(%arg0: i32) -> (i32, i32) {
    %c0_i32 = arith.constant 0 : i32
    %c0_i32_0 = arith.constant 0 : i32
    return %arg0, %c0_i32 : i32, i32
  }
}

</mosaic_0001>

<bundles_post_ra>
// kernel: forward.1
= control target key start
LH: loop header
LB: loop body
LE: loop exit
PB: predicated region body
PF: predicated region fallthrough
CT: control target
= control target key end

     0   :  { %s869_s22 = smov 127   ;;  %s1099_s0 = inlined_call_operand.vmem [shape: f32[2,4,342], index: 0, kind: input, shape index: {}]   ;;  %s1100_s1 = inlined_call_operand.vmem [shape: f32[8,37], index: 1, kind: input, shape index: {}]   ;;  %s1101_s2 = inlined_call_operand.vmem [shape: f32[1,288], index: 2, kind: input, shape index: {}]   ;;  %s1102_s3 = inlined_call_operand.vmem [shape: f32[8,128], index: 3, kind: input, shape index: {}]   ;;  %s1103_s4 = inlined_call_operand.vmem [shape: f32[1,128], index: 4, kind: input, shape index: {}]   ;;  %s1104_s5 = inlined_call_operand.hbm [shape: f32[2,128], index: 5, kind: output, shape index: {}]  }
   0x1   :  { %v28_v0 = vld [vmem:[%s1099_s0] sm:$0xff]  ;;  %v29_v1 = vld [vmem:[%s1099_s0 + $0x8] sm:$0xf] }
   0x2   :  { %42 = vrot.lane.b32.xlu0 %v28_v0, %s869_s22  ;;  %34 = vst [vmem:[#allocation2] sm:$0xf] %v28_v0  ;;  %v32_v2 = vcombine.high %v28_v0, %v28_v0  ;;  %v39_v3 = vcombine.low %v29_v1, %v29_v1 }
   0x3   :  { %10 = vsyncpa [#allocation4], 0  ;;  %s870_s23 = smov 126   ;;  %vm36_vm0 = vcmask 257024   ;;  %v871_v4 = vmov 0.0|0.0   ;;  %s872_s24 = smov 110   ;;  %v38_v5 = vcombine.low %v28_v0, %v28_v0  ;;  %v21_v6 = vlaneseq }
   0x4   :  { %58 = vrot.lane.b32.xlu1 %v32_v2, %s870_s23  ;;  %35 = vst [vmem:[#allocation2 + $0x8] sm:$0xf] %v32_v2  ;;  %37 = vst.msk [vmem:[#allocation2 + $0x10] sm:$0xf] %vm36_vm0, %v29_v1  ;;  %794 = vmatprep.subr.bf16.mxu1 %v871_v4  ;;  %s873_s25 = smov 109   ;;  %s874_s26 = smov 108  }
   0x5   :  { %s875_s27 = smov 92   ;;  %s876_s28 = smov 91   ;;  %vm23_vm1 = vcmp.lt.s32.totalorder %v21_v6, 288  ;;  %v877_v7 = vmov 1.0   ;;  %v878_v8 = vmov 0.0   ;;  %v950_v10 = vld [vmem:[%s1099_s0 + $0xc] sm:$0xff] }
   0x6   :  { %44 = vrot.lane.b32.xlu0 %v39_v3, %s869_s22  ;;  %26 = vst.msk [vmem:[#allocation2 + $0x64] ss:$8 sm:$0x7] %vm23_vm1, %v877_v7  ;;  %255 = vmatprep.mubr.f32.mxu0 %v878_v8  ;;  %v742_v9 = vld [vmem:[%s1099_s0 + $0x14] sm:$0xf]  ;;  %s879_s6 = smov 90   ;;  %v386_v12 = vcombine.high %v950_v10, %v950_v10  ;;  %v391_v13 = vcombine.low %v950_v10, %v950_v10 }
   0x7   :  { %v392_v11 = vcombine.low %v742_v9, %v742_v9  ;;  %vm880_vm2 = vmmov 0   ;;  %vm46_vm3 = vcmask 1039360   ;;  %vm54_vm4 = vcmask 261124   ;;  %s881_s17 = smov [#allocation3]  }
   0x8   :  { %60 = vrot.lane.b32.xlu1 %v29_v1, %s870_s23  ;;  %770 = vmatprep.mubr.msk.f32.mxu1 %vm880_vm2, %v878_v8  ;;  %vm62_vm5 = vcmask 1031168   ;;  %vm77_vm6 = vcmask 900096   ;;  %vm92_vm7 = vcmask 891904   ;;  %vm107_vm8 = vcmask 883712   ;;  %s728_s18 = sshll.u32 %s881_s17, 4  ;;  %s729_s18 = int_to_ptr.vmem [resolvable:$true] %s728_s18 }
   0x9   :  { %vm122_vm9 = vcmask 752640   ;;  %vm137_vm10 = vcmask 744448   ;;  %vm152_vm11 = vcmask 736256   ;;  %vm181_vm12 = vcmask 1044480   ;;  %s845_s19 = scalar_lea.vmem %s729_s18, 32  ;;  %p850_p1 = scmp.lt.s32.totalorder %s729_s18, %s729_s18 }
   0xa   :  { %73 = vrot.lane.b32.xlu0 %v28_v0, %s872_s24  ;;  %vm177_vm13 = vcmask 302080   ;;  %vm365_vm14 = vcmask 261120   ;;  %p846_p0 = scmp.ne.s32.totalorder %s729_s18, %s845_s19  ;;  %p851_p2 = scmp.lt.s32.totalorder %s845_s19, %s845_s19 }
   0xc   :  { %75 = vrot.lane.b32.xlu1 %v39_v3, %s872_s24  ;;  %p852_p3 = por %p851_p2, %p850_p1 }
   0xe   :  { %40 = vrot.lane.b32.xlu0 %v38_v5, %s869_s22  ;;  %p853_p4 = pnand %p852_p3, %p846_p0 }
  0x10   :  { %56 = vrot.lane.b32.xlu1 %v28_v0, %s870_s23 }
  0x12   :  { %71 = vrot.lane.b32.xlu0 %v38_v5, %s872_s24 }
  0x14   :  { %88 = vrot.lane.b32.xlu1 %v32_v2, %s873_s25 }
  0x16   :  { %90 = vrot.lane.b32.xlu0 %v29_v1, %s873_s25 }
  0x18   :  { %103 = vrot.lane.b32.xlu1 %v28_v0, %s874_s26 }
  0x1a   :  { %105 = vrot.lane.b32.xlu0 %v39_v3, %s874_s26 }
  0x1c   :  { %118 = vrot.lane.b32.xlu1 %v32_v2, %s875_s27 }
  0x1e   :  { %120 = vrot.lane.b32.xlu0 %v29_v1, %s875_s27 }
  0x20   :  { %133 = vrot.lane.b32.xlu1 %v28_v0, %s876_s28 }
  0x22   :  { %135 = vrot.lane.b32.xlu0 %v39_v3, %s876_s28 }
  0x24   :  { %86 = vrot.lane.b32.xlu1 %v28_v0, %s873_s25 }
  0x26   :  { %101 = vrot.lane.b32.xlu0 %v38_v5, %s874_s26 }
  0x28   :  { %116 = vrot.lane.b32.xlu1 %v28_v0, %s875_s27 }
  0x2a   :  { %131 = vrot.lane.b32.xlu0 %v38_v5, %s876_s28 }
  0x2c   :  { %148 = vrot.lane.b32.xlu1 %v32_v2, %s879_s6 }
  0x2e   :  { %150 = vrot.lane.b32.xlu0 %v29_v1, %s879_s6 }
  0x30   :  { %395 = vrot.lane.b32.xlu1 %v950_v10, %s869_s22 }
  0x32   :  { %397 = vrot.lane.b32.xlu0 %v392_v11, %s869_s22 }
  0x34   :  { %409 = vrot.lane.b32.xlu1 %v386_v12, %s870_s23 }
  0x36   :  { %411 = vrot.lane.b32.xlu0 %v742_v9, %s870_s23 }
  0x38   :  { %423 = vrot.lane.b32.xlu1 %v950_v10, %s872_s24 }
  0x3a   :  { %425 = vrot.lane.b32.xlu0 %v392_v11, %s872_s24 }
  0x3c   :  { %146 = vrot.lane.b32.xlu1 %v28_v0, %s879_s6 }
  0x3e   :  { %393 = vrot.lane.b32.xlu0 %v391_v13, %s869_s22 }
  0x40   :  { %407 = vrot.lane.b32.xlu1 %v950_v10, %s870_s23 }
  0x42   :  { %421 = vrot.lane.b32.xlu0 %v391_v13, %s872_s24 }
  0x44   :  { %437 = vrot.lane.b32.xlu1 %v386_v12, %s873_s25 }
  0x46   :  { %439 = vrot.lane.b32.xlu0 %v742_v9, %s873_s25 }
  0x48   :  { %451 = vrot.lane.b32.xlu1 %v950_v10, %s874_s26 }
  0x4a   :  { %453 = vrot.lane.b32.xlu0 %v392_v11, %s874_s26 }
  0x4c   :  { %465 = vrot.lane.b32.xlu1 %v386_v12, %s875_s27 }
  0x4e   :  { %467 = vrot.lane.b32.xlu0 %v742_v9, %s875_s27 }
  0x50   :  { %479 = vrot.lane.b32.xlu1 %v950_v10, %s876_s28 }
  0x52   :  { %481 = vrot.lane.b32.xlu0 %v392_v11, %s876_s28 }
  0x54   :  { %435 = vrot.lane.b32.xlu1 %v950_v10, %s873_s25 }
  0x56   :  { %449 = vrot.lane.b32.xlu0 %v391_v13, %s874_s26 }
  0x58   :  { %463 = vrot.lane.b32.xlu1 %v950_v10, %s875_s27 }
  0x5a   :  { %477 = vrot.lane.b32.xlu0 %v391_v13, %s876_s28 }
  0x5c   :  { %493 = vrot.lane.b32.xlu1 %v386_v12, %s879_s6 }
  0x5e   :  { %495 = vrot.lane.b32.xlu0 %v742_v9, %s879_s6 }
  0x60   :  { %491 = vrot.lane.b32.xlu1 %v950_v10, %s879_s6 }
  0x74   :  { %v43_v14 = vpop.permute.xlu0 %42 }
  0x76   :  { %v59_v15 = vpop.permute.xlu1 %58 }
  0x78   :  { %v45_v16 = vpop.permute.xlu0 %44 }
  0x79   :  { %v48_v17 = vsel %vm46_vm3, %v43_v14, %v45_v16  ;;  %55 = vst.msk [vmem:[#allocation2 + $0x10] sm:$0xf0] %vm54_vm4, %v45_v16 }
  0x7a   :  { %53 = vst [vmem:[#allocation2 + $0x8] sm:$0xf0] %v48_v17  ;;  %v61_v18 = vpop.permute.xlu1 %60 }
  0x7b   :  { %v64_v19 = vsel %vm62_vm5, %v59_v15, %v61_v18  ;;  %70 = vst.msk [vmem:[#allocation2 + $0x28] sm:$0xf] %vm36_vm0, %v61_v18 }
  0x7c   :  { %69 = vst [vmem:[#allocation2 + $0x20] sm:$0xf] %v64_v19  ;;  %v74_v20 = vpop.permute.xlu0 %73 }
  0x7e   :  { %v76_v21 = vpop.permute.xlu1 %75 }
  0x7f   :  { %v79_v22 = vsel %vm77_vm6, %v74_v20, %v76_v21  ;;  %85 = vst.msk [vmem:[#allocation2 + $0x28] sm:$0xf0] %vm54_vm4, %v76_v21 }
  0x80   :  { %84 = vst [vmem:[#allocation2 + $0x20] sm:$0xf0] %v79_v22  ;;  %v41_v23 = vpop.permute.xlu0 %40  ;;  %v164_v24 = vld [vmem:[#allocation2 + $0x10] sm:$0xff] }
  0x81   :  { %v47_v25 = vsel %vm46_vm3, %v41_v23, %v43_v14  ;;  %390 = vst.msk [vmem:[#allocation2 + $0x10] sm:$0xf] %vm36_vm0, %v742_v9  ;;  %v163_v26 = vld [vmem:[#allocation2 + $0x8] sm:$0xff] }
  0x82   :  { %52 = vst [vmem:[#allocation2] sm:$0xf0] %v47_v25  ;;  %v57_v27 = vpop.permute.xlu1 %56  ;;  %389 = vst [vmem:[#allocation2 + $0x8] sm:$0xf] %v386_v12 }
  0x83   :  { %v63_v28 = vsel %vm62_vm5, %v57_v27, %v59_v15  ;;  %v1024_v15 = vld [vmem:[%s1100_s1] sm:$0xff] }
  0x84   :  { %68 = vst [vmem:[#allocation2 + $0x18] sm:$0xf] %v63_v28  ;;  %v72_v29 = vpop.permute.xlu0 %71 }
  0x85   :  { %v78_v30 = vsel %vm77_vm6, %v72_v29, %v74_v20 }
  0x86   :  { %83 = vst [vmem:[#allocation2 + $0x18] sm:$0xf0] %v78_v30  ;;  %v89_v31 = vpop.permute.xlu1 %88  ;;  %v167_v32 = vld [vmem:[#allocation2 + $0x28] sm:$0xff] }
  0x87   :  { %v795_v33 = vpack.c.bf16 %v167_v32, %v164_v24  ;;  %v166_v34 = vld [vmem:[#allocation2 + $0x20] sm:$0xff] }
  0x88   :  { %v91_v35 = vpop.permute.xlu0 %90  ;;  %v786_v36 = vpack.c.bf16 %v166_v34, %v163_v26 }
  0x89   :  { %v94_v37 = vsel %vm92_vm7, %v89_v31, %v91_v35  ;;  %100 = vst.msk [vmem:[#allocation2 + $0x40] sm:$0xf] %vm36_vm0, %v91_v35  ;;  %796 = vmatpush3.bf16.msra.mxu1 %v795_v33  ;;  %v162_v38 = vld [vmem:[#allocation2] sm:$0xff] }
  0x8a   :  { %99 = vst [vmem:[#allocation2 + $0x38] sm:$0xf] %v94_v37  ;;  %v104_v39 = vpop.permute.xlu1 %103  ;;  %787 = vmatprep.subr.bf16.mxu0 %v786_v36  ;;  %388 = vst [vmem:[#allocation2] sm:$0xf] %v950_v10  ;;  %797 = vmatprep.subr.bf16.mxu1 %v871_v4 }
  0x8c   :  { %v106_v40 = vpop.permute.xlu0 %105 }
  0x8d   :  { %v109_v41 = vsel %vm107_vm8, %v104_v39, %v106_v40  ;;  %115 = vst.msk [vmem:[#allocation2 + $0x40] sm:$0xf0] %vm54_vm4, %v106_v40  ;;  %v165_v42 = vld [vmem:[#allocation2 + $0x18] sm:$0xff] }
  0x8e   :  { %114 = vst [vmem:[#allocation2 + $0x38] sm:$0xf0] %v109_v41  ;;  %v119_v43 = vpop.permute.xlu1 %118  ;;  %v788_v44 = vpack.c.bf16 %v165_v42, %v162_v38 }
  0x90   :  { %v121_v45 = vpop.permute.xlu0 %120  ;;  %789 = vmatpush1.bf16.msra.mxu0 %v788_v44 }
  0x91   :  { %v124_v46 = vsel %vm122_vm9, %v119_v43, %v121_v45  ;;  %130 = vst.msk [vmem:[#allocation2 + $0x58] sm:$0xf] %vm36_vm0, %v121_v45 }
  0x92   :  { %129 = vst [vmem:[#allocation2 + $0x50] sm:$0xf] %v124_v46  ;;  %v134_v47 = vpop.permute.xlu1 %133 }
  0x94   :  { %v136_v48 = vpop.permute.xlu0 %135  ;;  %v170_v57 = vld [vmem:[#allocation2 + $0x40] sm:$0xff] }
  0x95   :  { %v139_v49 = vsel %vm137_vm10, %v134_v47, %v136_v48  ;;  %145 = vst.msk [vmem:[#allocation2 + $0x58] sm:$0xf0] %vm54_vm4, %v136_v48  ;;  %v169_v61 = vld [vmem:[#allocation2 + $0x38] sm:$0xff] }
  0x96   :  { %144 = vst [vmem:[#allocation2 + $0x50] sm:$0xf0] %v139_v49  ;;  %v87_v50 = vpop.permute.xlu1 %86 }
  0x97   :  { %v93_v51 = vsel %vm92_vm7, %v87_v50, %v89_v31 }
  0x98   :  { %98 = vst [vmem:[#allocation2 + $0x30] sm:$0xf] %v93_v51  ;;  %v102_v52 = vpop.permute.xlu0 %101 }
  0x99   :  { %v108_v53 = vsel %vm107_vm8, %v102_v52, %v104_v39 }
  0x9a   :  { %113 = vst [vmem:[#allocation2 + $0x30] sm:$0xf0] %v108_v53  ;;  %v117_v54 = vpop.permute.xlu1 %116 }
  0x9b   :  { %v123_v55 = vsel %vm122_vm9, %v117_v54, %v119_v43 }
  0x9c   :  { %128 = vst [vmem:[#allocation2 + $0x48] sm:$0xf] %v123_v55  ;;  %v132_v56 = vpop.permute.xlu0 %131  ;;  %v173_v58 = vld [vmem:[#allocation2 + $0x58] sm:$0xff] }
  0x9d   :  { %v138_v59 = vsel %vm137_vm10, %v132_v56, %v134_v47  ;;  %v798_v60 = vpack.c.bf16 %v173_v58, %v170_v57  ;;  %v172_v62 = vld [vmem:[#allocation2 + $0x50] sm:$0xff] }
  0x9e   :  { %143 = vst [vmem:[#allocation2 + $0x48] sm:$0xf0] %v138_v59  ;;  %v149_v63 = vpop.permute.xlu1 %148  ;;  %v790_v0 = vpack.c.bf16 %v172_v62, %v169_v61 }
  0x9f   :  { %799 = vmatpush3.bf16.msra.mxu1 %v798_v60 }
  0xa0   :  { %v151_v1 = vpop.permute.xlu0 %150  ;;  %791 = vmatprep.subr.bf16.mxu0 %v790_v0  ;;  %768 = vmatprep.subr.mxu1 %v878_v8 }
  0xa1   :  { %v154_v2 = vsel %vm152_vm11, %v149_v63, %v151_v1  ;;  %160 = vst.msk [vmem:[#allocation2 + $0x70] sm:$0xf] %vm36_vm0, %v151_v1  ;;  %v168_v9 = vld [vmem:[#allocation2 + $0x30] sm:$0xff] }
  0xa2   :  { %159 = vst [vmem:[#allocation2 + $0x68] sm:$0xf] %v154_v2  ;;  %v396_v3 = vpop.permute.xlu1 %395 }
  0xa4   :  { %v398_v5 = vpop.permute.xlu0 %397 }
  0xa5   :  { %v400_v7 = vsel %vm46_vm3, %v396_v3, %v398_v5  ;;  %406 = vst.msk [vmem:[#allocation2 + $0x10] sm:$0xf0] %vm54_vm4, %v398_v5  ;;  %v171_v10 = vld [vmem:[#allocation2 + $0x48] sm:$0xff] }
  0xa6   :  { %405 = vst [vmem:[#allocation2 + $0x8] sm:$0xf0] %v400_v7  ;;  %v410_v11 = vpop.permute.xlu1 %409  ;;  %v792_v12 = vpack.c.bf16 %v171_v10, %v168_v9 }
  0xa8   :  { %v412_v13 = vpop.permute.xlu0 %411  ;;  %793 = vmatpush1.bf16.msra.mxu0 %v792_v12  ;;  %v176_v14 = vld [vmem:[#allocation2 + $0x70] sm:$0x1f] }
  0xa9   :  { %v414_v16 = vsel %vm62_vm5, %v410_v11, %v412_v13  ;;  %420 = vst.msk [vmem:[#allocation2 + $0x28] sm:$0xf] %vm36_vm0, %v412_v13  ;;  %769 = vmatpush3.msk.msra.mxu1 %vm181_vm12, %v176_v14  ;;  %v175_v17 = vld [vmem:[#allocation2 + $0x68] sm:$0x1f] }
  0xaa   :  { %419 = vst [vmem:[#allocation2 + $0x20] sm:$0xf] %v414_v16  ;;  %v424_v18 = vpop.permute.xlu1 %423  ;;  %736 = vmatprep.subr.msk.mxu0 %vm181_vm12, %v175_v17  ;;  %808 = vmatprep.subr.bf16.mxu1 %v871_v4 }
  0xab   :  { %771 = vmatmul.mubr.msk.f32.vlgmr.msra.gmra.mrb[0].mxu1 %vm177_vm13, %v1024_v15 }
  0xac   :  { %v426_v19 = vpop.permute.xlu0 %425  ;;  %783 = vmatprep.mubr.msk.f32.mxu1 %vm880_vm2, %v878_v8  ;;  %v508_v28 = vld [vmem:[#allocation2 + $0x10] sm:$0xff] }
  0xad   :  { %v428_v20 = vsel %vm77_vm6, %v424_v18, %v426_v19  ;;  %434 = vst.msk [vmem:[#allocation2 + $0x28] sm:$0xf0] %vm54_vm4, %v426_v19  ;;  %v507_v32 = vld [vmem:[#allocation2 + $0x8] sm:$0xff] }
  0xae   :  { %433 = vst [vmem:[#allocation2 + $0x20] sm:$0xf0] %v428_v20  ;;  %v147_v21 = vpop.permute.xlu1 %146 }
  0xaf   :  { %v153_v22 = vsel %vm152_vm11, %v147_v21, %v149_v63  ;;  %v347_v21 = vshrl.u32 %v21_v6, 7 }
  0xb0   :  { %158 = vst [vmem:[#allocation2 + $0x60] sm:$0xf] %v153_v22  ;;  %v394_v23 = vpop.permute.xlu0 %393 }
  0xb1   :  { %v399_v24 = vsel %vm46_vm3, %v394_v23, %v396_v3 }
  0xb2   :  { %404 = vst [vmem:[#allocation2] sm:$0xf0] %v399_v24  ;;  %v408_v25 = vpop.permute.xlu1 %407  ;;  %v356_v24 = vsub.s32 2, %v347_v21 }
  0xb3   :  { %v413_v26 = vsel %vm62_vm5, %v408_v25, %v410_v11  ;;  %v344_v25 = vld [vmem:[%s1101_s2] sm:$0x7] }
  0xb4   :  { %418 = vst [vmem:[#allocation2 + $0x18] sm:$0xf] %v413_v26  ;;  %v422_v27 = vpop.permute.xlu0 %421  ;;  %v511_v29 = vld [vmem:[#allocation2 + $0x28] sm:$0xff]  ;;  %v352_v26 = vsub.s32 1, %v347_v21 }
  0xb5   :  { %v427_v30 = vsel %vm77_vm6, %v422_v27, %v424_v18  ;;  %v809_v31 = vpack.c.bf16 %v511_v29, %v508_v28  ;;  %v510_v33 = vld [vmem:[#allocation2 + $0x20] sm:$0xff]  ;;  %v357_v28 = vrot.slane %v344_v25, %v356_v24 }
  0xb6   :  { %432 = vst [vmem:[#allocation2 + $0x18] sm:$0xf0] %v427_v30  ;;  %v438_v34 = vpop.permute.xlu1 %437  ;;  %v800_v35 = vpack.c.bf16 %v510_v33, %v507_v32 }
  0xb7   :  { %810 = vmatpush3.bf16.msra.mxu1 %v809_v31  ;;  %v174_v36 = vld [vmem:[#allocation2 + $0x60] sm:$0x1f] }
  0xb8   :  { %v440_v37 = vpop.permute.xlu0 %439  ;;  %737 = vmatpush1.msk.msra.mxu0 %vm181_vm12, %v174_v36  ;;  %811 = vmatprep.subr.bf16.mxu1 %v871_v4 }
  0xb9   :  { %v442_v38 = vsel %vm92_vm7, %v438_v34, %v440_v37  ;;  %448 = vst.msk [vmem:[#allocation2 + $0x40] sm:$0xf] %vm36_vm0, %v440_v37  ;;  %801 = vmatprep.subr.bf16.mxu0 %v800_v35  ;;  %738 = vmatmul.mubr.msk.f32.vlgmr.msra.gmra.mrb[0].mxu0 %vm177_vm13, %v1024_v15  ;;  %v506_v42 = vld [vmem:[#allocation2] sm:$0xff] }
  0xba   :  { %447 = vst [vmem:[#allocation2 + $0x38] sm:$0xf] %v442_v38  ;;  %v452_v39 = vpop.permute.xlu1 %451  ;;  %597 = vmatprep.mubr.f32.mxu0 %v878_v8 }
  0xbc   :  { %v454_v40 = vpop.permute.xlu0 %453 }
  0xbd   :  { %v456_v41 = vsel %vm107_vm8, %v452_v39, %v454_v40  ;;  %462 = vst.msk [vmem:[#allocation2 + $0x40] sm:$0xf0] %vm54_vm4, %v454_v40  ;;  %v509_v43 = vld [vmem:[#allocation2 + $0x18] sm:$0xff] }
  0xbe   :  { %461 = vst [vmem:[#allocation2 + $0x38] sm:$0xf0] %v456_v41  ;;  %v466_v4 = vpop.permute.xlu1 %465  ;;  %v802_v44 = vpack.c.bf16 %v509_v43, %v506_v42 }
  0xc0   :  { %v468_v45 = vpop.permute.xlu0 %467  ;;  %803 = vmatpush1.bf16.msra.mxu0 %v802_v44 }
  0xc1   :  { %v470_v46 = vsel %vm122_vm9, %v466_v4, %v468_v45  ;;  %476 = vst.msk [vmem:[#allocation2 + $0x58] sm:$0xf] %vm36_vm0, %v468_v45 }
  0xc2   :  { %475 = vst [vmem:[#allocation2 + $0x50] sm:$0xf] %v470_v46  ;;  %v480_v47 = vpop.permute.xlu1 %479 }
  0xc4   :  { %v482_v48 = vpop.permute.xlu0 %481  ;;  %v514_v57 = vld [vmem:[#allocation2 + $0x40] sm:$0xff] }
  0xc5   :  { %v484_v49 = vsel %vm137_vm10, %v480_v47, %v482_v48  ;;  %490 = vst.msk [vmem:[#allocation2 + $0x58] sm:$0xf0] %vm54_vm4, %v482_v48  ;;  %v513_v61 = vld [vmem:[#allocation2 + $0x38] sm:$0xff] }
  0xc6   :  { %489 = vst [vmem:[#allocation2 + $0x50] sm:$0xf0] %v484_v49  ;;  %v436_v50 = vpop.permute.xlu1 %435 }
  0xc7   :  { %v441_v51 = vsel %vm92_vm7, %v436_v50, %v438_v34  ;;  %v353_v34 = vrot.slane %v344_v25, %v352_v26  ;;  %v686_v50 = vld [vmem:[%s1101_s2] sm:$0x7] }
  0xc8   :  { %446 = vst [vmem:[#allocation2 + $0x30] sm:$0xf] %v441_v51  ;;  %v450_v52 = vpop.permute.xlu0 %449  ;;  %v699_v51 = vrot.slane %v686_v50, %v356_v24  ;;  %v719_v24 = vld [vmem:[%s1103_s4] sm:$0x1] }
  0xc9   :  { %v455_v53 = vsel %vm107_vm8, %v450_v52, %v452_v39 }
  0xca   :  { %460 = vst [vmem:[#allocation2 + $0x30] sm:$0xf0] %v455_v53  ;;  %v464_v54 = vpop.permute.xlu1 %463 }
  0xcb   :  { %v469_v55 = vsel %vm122_vm9, %v464_v54, %v466_v4 }
  0xcc   :  { %474 = vst [vmem:[#allocation2 + $0x48] sm:$0xf] %v469_v55  ;;  %v478_v56 = vpop.permute.xlu0 %477  ;;  %v517_v58 = vld [vmem:[#allocation2 + $0x58] sm:$0xff] }
  0xcd   :  { %v483_v59 = vsel %vm137_vm10, %v478_v56, %v480_v47  ;;  %v812_v60 = vpack.c.bf16 %v517_v58, %v514_v57  ;;  %v516_v62 = vld [vmem:[#allocation2 + $0x50] sm:$0xff]  ;;  %v695_v58 = vrot.slane %v686_v50, %v352_v26 }
  0xce   :  { %488 = vst [vmem:[#allocation2 + $0x48] sm:$0xf0] %v483_v59  ;;  %v494_v63 = vpop.permute.xlu1 %493  ;;  %v804_v0 = vpack.c.bf16 %v516_v62, %v513_v61 }
  0xcf   :  { %813 = vmatpush3.bf16.msra.mxu1 %v812_v60 }
  0xd0   :  { %v496_v1 = vpop.permute.xlu0 %495  ;;  %805 = vmatprep.subr.bf16.mxu0 %v804_v0  ;;  %781 = vmatprep.subr.mxu1 %v878_v8 }
  0xd1   :  { %v498_v2 = vsel %vm152_vm11, %v494_v63, %v496_v1  ;;  %504 = vst.msk [vmem:[#allocation2 + $0x70] sm:$0xf] %vm36_vm0, %v496_v1  ;;  %v512_v7 = vld [vmem:[#allocation2 + $0x30] sm:$0xff] }
  0xd2   :  { %503 = vst [vmem:[#allocation2 + $0x68] sm:$0xf] %v498_v2  ;;  %v492_v3 = vpop.permute.xlu1 %491 }
  0xd3   :  { %v497_v5 = vsel %vm152_vm11, %v492_v3, %v494_v63  ;;  %v370_v3 = vld [vmem:[%s1102_s3] sm:$0xff] }
  0xd4   :  { %502 = vst [vmem:[#allocation2 + $0x60] sm:$0xf] %v497_v5 }
  0xd5   :  { %v515_v9 = vld [vmem:[#allocation2 + $0x48] sm:$0xff] }
  0xd6   :  { %v806_v10 = vpack.c.bf16 %v515_v9, %v512_v7 }
  0xd8   :  { %807 = vmatpush1.bf16.msra.mxu0 %v806_v10  ;;  %v520_v11 = vld [vmem:[#allocation2 + $0x70] sm:$0x1f] }
  0xd9   :  { %v519_v12 = vld [vmem:[#allocation2 + $0x68] sm:$0x1f]  ;;  %782 = vmatpush3.msk.msra.mxu1 %vm181_vm12, %v520_v11 }
  0xda   :  { %743 = vmatprep.subr.msk.mxu0 %vm181_vm12, %v519_v12  ;;  %784 = vmatmul.mubr.msk.f32.vlgmr.msra.gmra.mrb[2].mxu1 %vm177_vm13, %v1024_v15 }
  0xdb   :  { %v518_v8 = vld [vmem:[#allocation2 + $0x60] sm:$0x1f] }
  0xdc   :  { %744 = vmatpush1.msk.msra.mxu0 %vm181_vm12, %v518_v8 }
  0xdd   :  { %745 = vmatmul.mubr.msk.f32.vlgmr.msra.gmra.mrb[2].mxu0 %vm177_vm13, %v1024_v15  ;;  %v348_v15 = vsub.s32 0, %v347_v21 }
  0xdf   :  { %v349_v32 = vrot.slane %v344_v25, %v348_v15  ;;  %v691_v56 = vrot.slane %v686_v50, %v348_v15 }
 0x17e   :  { %v328_v13 = vpop.f32.mrb[0].mxu1 }
 0x17f   :  { %v772_v14 = vpop.f32.mrb[1].mxu1  ;;  %v334_v16 = vmul.f32 0.5, %v328_v13  ;;  %v378_v13 = vld [vmem:[%s1103_s4] sm:$0x1] }
 0x181   :  { %833 = vtanh.f32 %v334_v16 }
 0x18b   :  { %v834_v22 = vpop.eup %833 }
 0x18c   :  { %v257_v17 = vpop.f32.mrb[0].mxu0  ;;  %v340_v23 = vmul.f32 0.5, %v834_v22 }
 0x18d   :  { %v332_v18 = vmul.f32 0.5, %v257_v17  ;;  %v259_v19 = vpop.f32.mrb[1].mxu0 }
 0x18e   :  { %v333_v20 = vmul.f32 0.5, %v259_v19  ;;  %v343_v27 = vadd.f32 0.5, %v340_v23 }
 0x18f   :  { %835 = vtanh.f32 %v332_v18 }
 0x190   :  { %837 = vtanh.f32 %v333_v20  ;;  %v363_v36 = vmul.f32 %v357_v28, %v343_v27 }
 0x192   :  { %v366_v39 = vsel %vm365_vm14, %v363_v36, 0.0 }
 0x199   :  { %v836_v29 = vpop.eup %835 }
 0x19a   :  { %v838_v30 = vpop.eup %837  ;;  %v338_v31 = vmul.f32 0.5, %v836_v29 }
 0x19b   :  { %v339_v33 = vmul.f32 0.5, %v838_v30 }
 0x19c   :  { %v341_v35 = vadd.f32 0.5, %v338_v31 }
 0x19d   :  { %v342_v6 = vadd.f32 0.5, %v339_v33 }
 0x19e   :  { %v361_v37 = vmul.f32 %v349_v32, %v341_v35 }
 0x19f   :  { %v362_v38 = vmul.f32 %v353_v34, %v342_v6 }
 0x1a1   :  { %v364_v40 = vadd.f32 %v362_v38, %v361_v37 }
 0x1a3   :  { %v367_v41 = vadd.f32 %v366_v39, %v364_v40 }
 0x1a5   :  { %368 = vadd.xlane.f32.xlu0 %v367_v41 }
 0x1ad   :  { %v670_v42 = vpop.f32.mrb[2].mxu1 }
 0x1ae   :  { %v676_v43 = vmul.f32 0.5, %v670_v42  ;;  %v785_v4 = vpop.f32.mrb[3].mxu1 }
 0x1b0   :  { %v599_v44 = vpop.f32.mrb[2].mxu0  ;;  %839 = vtanh.f32 %v676_v43 }
 0x1b1   :  { %v674_v45 = vmul.f32 0.5, %v599_v44  ;;  %v601_v46 = vpop.f32.mrb[3].mxu0 }
 0x1b2   :  { %v675_v47 = vmul.f32 0.5, %v601_v46 }
 0x1b3   :  { %841 = vtanh.f32 %v674_v45 }
 0x1b4   :  { %843 = vtanh.f32 %v675_v47 }
 0x1ba   :  { %v840_v48 = vpop.eup %839 }
 0x1bb   :  { %v682_v49 = vmul.f32 0.5, %v840_v48 }
 0x1bd   :  { %v842_v52 = vpop.eup %841  ;;  %v685_v53 = vadd.f32 0.5, %v682_v49 }
 0x1be   :  { %v844_v54 = vpop.eup %843  ;;  %v680_v55 = vmul.f32 0.5, %v842_v52 }
 0x1bf   :  { %v681_v57 = vmul.f32 0.5, %v844_v54  ;;  %v705_v60 = vmul.f32 %v699_v51, %v685_v53 }
 0x1c0   :  { %v683_v59 = vadd.f32 0.5, %v680_v55 }
 0x1c1   :  { %v684_v61 = vadd.f32 0.5, %v681_v57  ;;  %v707_v0 = vsel %vm365_vm14, %v705_v60, 0.0 }
 0x1c2   :  { %v703_v62 = vmul.f32 %v691_v56, %v683_v59 }
 0x1c3   :  { %v704_v63 = vmul.f32 %v695_v58, %v684_v61 }
 0x1c5   :  { %v706_v1 = vadd.f32 %v704_v63, %v703_v62 }
 0x1c7   :  { %v708_v2 = vadd.f32 %v707_v0, %v706_v1 }
 0x1c9   :  { %709 = vadd.xlane.f32.xlu1 %v708_v2 }
 0x232   :  { %v369_v5 = vpop.xlane.xlu0 %368 }
 0x233   :  { %v371_v7 = vmul.f32 %v370_v3, %v369_v5 }
 0x235   :  { %v372_v9 = vrot.slane %v371_v7, 4 }
 0x237   :  { %v373_v10 = vadd.f32 %v372_v9, %v371_v7 }
 0x239   :  { %v374_v11 = vrot.slane %v373_v10, 2 }
 0x23b   :  { %v375_v12 = vadd.f32 %v374_v11, %v373_v10 }
 0x23d   :  { %v376_v8 = vrot.slane %v375_v12, 1 }
 0x23f   :  { %v377_v14 = vadd.f32 %v376_v8, %v375_v12 }
 0x241   :  { %v379_v16 = vadd.f32 %v378_v13, %v377_v14 }
 0x243   :  { %380 = vst [vmem:[#allocation3] sm:$0x1] %v379_v16 }
 0x256   :  { %v710_v17 = vpop.xlane.xlu1 %709 }
 0x257   :  { %v712_v18 = vmul.f32 %v710_v17, %v370_v3 }
 0x259   :  { %v713_v19 = vrot.slane %v712_v18, 4 }
 0x25b   :  { %v714_v20 = vadd.f32 %v713_v19, %v712_v18 }
 0x25d   :  { %v715_v21 = vrot.slane %v714_v20, 2 }
 0x25f   :  { %v716_v22 = vadd.f32 %v715_v21, %v714_v20 }
 0x261   :  { %v717_v23 = vrot.slane %v716_v22, 1 }
 0x263   :  { %v718_v25 = vadd.f32 %v717_v23, %v716_v22 }
 0x265   :  { %v720_v15 = vadd.f32 %v719_v24, %v718_v25 }
 0x267   :  { %721 = vst [vmem:[#allocation3 + $0x1] sm:$0x1] %v720_v15 }
 0x268   :  { %856 = shalt.err (!%p853_p4)
}
 0x269   :  { %s857_s22 = scalar_lea.hbm %s1104_s5, 32 }
 0x26a   :  { %p858_p5 = scmp.ne.s32.totalorder %s1104_s5, %s857_s22  ;;  %p861_p6 = scmp.lt.u32.totalorder %s857_s22, %s1104_s5 }
 0x26c   :  { %p863_p7 = pnand %p861_p6, %p858_p5 }
 0x26e   :  { %866 = shalt.err (!%p863_p7)
}
 0x26f   :  { %731 = dma.vmem_to_hbm [thread:$0]  %s729_s18, 32, %s1104_s5, [#allocation4]  }
 0x270   :  { %867 = dma.done.wait [#allocation4], 32  }
 0x271   :  { %868 = vsyncadd [#allocation4], 4294967264 }
 0x272   :  { %735 = vsyncpa [#allocation4], 1 }

</bundles_post_ra>
